<compile_context>
chip_gen: v6e
topology: v6e:2x2x1
jax: 0.10.0
libtpu: 0.0.40
codegen_flags: <defaults>
</compile_context>

<pallas_src>
import jax
import jax.numpy as jnp
from jax import lax
from jax.experimental import pallas as pl
from jax.experimental.pallas import tpu as pltpu


# --------------------------------------------------------------------------
# Pass 1: Gumbel-perturbed argmax over the vocab dimension.
# --------------------------------------------------------------------------
def _argmax_kernel(seed_ref, logits_ref, idx_ref):
    """seed_ref:   (1,) int32 in SMEM (scalar prefetch).
    logits_ref: (TM, N) float32 tile of token logits.
    idx_ref:    (TM, 1) int32 argmax index per token."""
    tm, n = logits_ref.shape
    seed = seed_ref[0].astype(jnp.uint32)

    # Stateless per-element counter: global (row, col) so the noise stream is
    # independent of the tiling and of program_id.
    row = lax.broadcasted_iota(jnp.int32, (tm, n), 0) + pl.program_id(0) * tm
    col = lax.broadcasted_iota(jnp.int32, (tm, n), 1)
    x = (row * n + col).astype(jnp.uint32)
    x = x + seed * jnp.uint32(0x9E3779B1)          # golden-ratio seed mixing

    # lowbias32 hash (pure VPU work: xor / shift / 32-bit multiply).
    x = x ^ (x >> 16)
    x = x * jnp.uint32(0x7FEB352D)
    x = x ^ (x >> 15)
    x = x * jnp.uint32(0x846CA68B)
    x = x ^ (x >> 16)

    # uniform in [0,1) from the top-ish 24 bits (exact in f32), clamped away
    # from 0 so the double log is finite.  Distributional (not bit-exact)
    # match to torch's gumbel noise; only affects which ties are broken.
    mant = jnp.bitwise_and(x, jnp.uint32(0x00FFFFFF)).astype(jnp.int32)
    u = mant.astype(jnp.float32) * jnp.float32(1.0 / (1 << 24))
    u = jnp.maximum(u, jnp.float32(1e-7))
    gumbel = -jnp.log(-jnp.log(u))

    # tau / softmax dropped: argmax is invariant to monotone transforms.
    g = logits_ref[...].astype(jnp.float32) + gumbel
    idx_ref[...] = jnp.argmax(g, axis=-1, keepdims=True).astype(jnp.int32)


# --------------------------------------------------------------------------
# Pass 2: row gather — one table row DMA'd per grid step, selected by a
# data-dependent index_map reading the scalar-prefetched indices.
# --------------------------------------------------------------------------
def _gather_kernel(idx_ref, row_ref, out_ref):
    del idx_ref                      # consumed by the index_maps only
    out_ref[...] = row_ref[...]      # (1, 1, D) copy


def _round8(x):
    return max(8, ((x + 7) // 8) * 8)


def differentiable_embedding_forward(logits, emb_table, tau=1.0, seed=0,
                                     block_tokens=1024):
    """logits: (B, S, N) float32; emb_table: (N, D) float32.
    Returns (B, S, D) float32 — embedding rows of the Gumbel-perturbed argmax,
    i.e. the same output as DifferentiableEmbedding.forward."""
    del tau  # argmax is invariant to the positive 1/tau scaling; the soft
             # probabilities (which tau shapes) never reach the forward output.
    B, S, N = logits.shape
    Nt, D = emb_table.shape
    assert Nt == N
    M = B * S

    logits2d = logits.reshape(M, N)
    seed_arr = jnp.asarray([seed], dtype=jnp.int32)

    # Per-generation VMEM capacity (v5e/v6e 128 MiB, v7x 64 MiB per TC);
    # conservative fallback when not running on a real TPU.
    try:
        vmem_cap = int(pltpu.get_tpu_info().vmem_capacity_bytes)
    except Exception:
        vmem_cap = 64 << 20
    vmem_budget = int(vmem_cap * 0.6)

    # Demand model for pass 1: double-buffered logits tile + double-buffered
    # index tile + ~10 live (TM, N) f32/i32 temporaries (iotas, hash, u,
    # gumbel, perturbed logits, argmax temps) + headroom.
    def _demand(t):
        return 4 * (2 * t * N + 2 * t + 10 * t * N) + (2 << 20)

    if M <= 64:
        TM = M                                   # single tiny block
    else:
        # Aim for >= 8 grid steps so v7x's two TensorCores both get work.
        TM = min(block_tokens, _round8(pl.cdiv(M, 8)))
        while TM > 8 and _demand(TM) > vmem_budget:
            TM = _round8(TM // 2)                # shrink TM, never the limit
    grid1 = (pl.cdiv(M, TM),)
    vmem_limit = int(min(max(_demand(TM), 4 << 20), vmem_budget))

    # ---- pass 1: perturbed argmax --------------------------------------
    idx2d = pl.pallas_call(
        _argmax_kernel,
        out_shape=jax.ShapeDtypeStruct((M, 1), jnp.int32),
        grid_spec=pltpu.PrefetchScalarGridSpec(
            num_scalar_prefetch=1,
            grid=grid1,
            in_specs=[pl.BlockSpec((TM, N), lambda i, seed: (i, 0))],
            out_specs=pl.BlockSpec((TM, 1), lambda i, seed: (i, 0)),
        ),
        compiler_params=pltpu.CompilerParams(
            dimension_semantics=("parallel",),
            vmem_limit_bytes=vmem_limit,
        ),
        cost_estimate=pl.CostEstimate(
            flops=20 * M * N,              # hash + compare VPU work
            transcendentals=2 * M * N,     # two logs per logit
            bytes_accessed=4 * M * N + 4 * M,
        ),
    )(seed_arr, logits2d)

    indices = idx2d.reshape(M)                   # 1-D for compact SMEM prefetch
    emb3 = emb_table.reshape(N, 1, D)            # (row, 1, D): (8,128)-rule-safe blocks

    # ---- pass 2: DMA row gather -----------------------------------------
    out3 = pl.pallas_call(
        _gather_kernel,
        out_shape=jax.ShapeDtypeStruct((M, 1, D), emb_table.dtype),
        grid_spec=pltpu.PrefetchScalarGridSpec(
            num_scalar_prefetch=1,
            grid=(M,),
            in_specs=[pl.BlockSpec((1, 1, D), lambda i, idx: (idx[i], 0, 0))],
            out_specs=pl.BlockSpec((1, 1, D), lambda i, idx: (i, 0, 0)),
        ),
        # pure double-buffered DMA copy, HBM-bound: megacore sharding adds no
        # bandwidth, so keep the axis "arbitrary".
        compiler_params=pltpu.CompilerParams(
            dimension_semantics=("arbitrary",),
        ),
        cost_estimate=pl.CostEstimate(
            flops=M * D,
            transcendentals=0,
            bytes_accessed=8 * M * D + 4 * M,
        ),
    )(indices, emb3)

    return out3.reshape(B, S, D)


if __name__ == "__main__":
    # Small shapes consistent with the module: batch=2, seq=8,
    # num_embeddings=16, embedding_dim=32, tau=1.
    B, S, NUM_EMB, EMB_DIM = 2, 8, 16, 32
    TAU = 1.0

    key = jax.random.PRNGKey(0)
    k_logits, k_emb = jax.random.split(key, 2)

    logits = jax.random.normal(k_logits, (B, S, NUM_EMB), dtype=jnp.float32)
    # nn.Embedding default init ~ N(0, 1); deterministic synthetic weights.
    emb_table = jax.random.normal(k_emb, (NUM_EMB, EMB_DIM), dtype=jnp.float32)

    out = differentiable_embedding_forward(logits, emb_table, TAU, seed=0)
    out = jax.block_until_ready(out)
    assert out.shape == (B, S, EMB_DIM)

    # Check 1: every output row is exactly one row of the embedding table
    # (the forward is a gather of some valid index for each token).
    out2d = out.reshape(B * S, EMB_DIM)
    diffs = jnp.abs(out2d[:, None, :] - emb_table[None, :, :]).max(axis=-1)
    assert bool(jnp.all(diffs.min(axis=-1) <= 1e-6)), \
        "output rows are not rows of the embedding table"

    # Check 2: determinism — same seed reproduces the same selection.
    out_again = jax.block_until_ready(
        differentiable_embedding_forward(logits, emb_table, TAU, seed=0))
    assert bool(jnp.all(out == out_again)), "kernel not deterministic for fixed seed"

    # Check 3: nothing is NaN/Inf.
    assert bool(jnp.all(jnp.isfinite(out)))

    print("KERNEL_OK")
</pallas_src>

<mosaic_0001>
module attributes {stable_mosaic.version = 11 : i64} {
  func.func @_argmax_kernel(%arg0: i32, %arg1: memref<1xi32, #tpu.memory_space<smem>>, %arg2: memref<16x16xf32, #tpu.memory_space<vmem>>, %arg3: memref<16x1xi32, #tpu.memory_space<vmem>>) attributes {dimension_semantics = [#tpu.dimension_semantics<parallel>], iteration_bounds = array<i64: 1>, scalar_prefetch = 1 : i64, scratch_operands = 0 : i64, tpu.core_type = #tpu.core_type<tc>, window_params = [{transform_indices = @transform_0, window_bounds = array<i64: 16, 16>}, {transform_indices = @transform_1, window_bounds = array<i64: 16, 1>}]} {
    %c0 = arith.constant 0 : index
    %0 = memref.load %arg1[%c0] : memref<1xi32, #tpu.memory_space<smem>>
    %1 = tpu.iota {dimensions = array<i32: 0>} : vector<16x16xi32>
    %c16_i32 = arith.constant 16 : i32
    %2 = arith.muli %arg0, %c16_i32 : i32
    %3 = vector.broadcast %2 : i32 to vector<16x16xi32>
    %4 = arith.addi %1, %3 : vector<16x16xi32>
    %5 = tpu.iota {dimensions = array<i32: 1>} : vector<16x16xi32>
    %c16_i32_0 = arith.constant 16 : i32
    %6 = vector.broadcast %c16_i32_0 : i32 to vector<16x16xi32>
    %7 = arith.muli %4, %6 : vector<16x16xi32>
    %8 = arith.addi %7, %5 : vector<16x16xi32>
    %c-1640531535_i32 = arith.constant -1640531535 : i32
    %9 = arith.muli %0, %c-1640531535_i32 : i32
    %10 = vector.broadcast %9 : i32 to vector<16x16xi32>
    %11 = arith.addi %8, %10 : vector<16x16xi32>
    %c16_i32_1 = arith.constant 16 : i32
    %12 = vector.broadcast %c16_i32_1 : i32 to vector<16x16xi32>
    %13 = arith.shrui %11, %12 : vector<16x16xi32>
    %14 = arith.xori %11, %13 : vector<16x16xi32>
    %c2146121005_i32 = arith.constant 2146121005 : i32
    %15 = vector.broadcast %c2146121005_i32 : i32 to vector<16x16xi32>
    %16 = arith.muli %14, %15 : vector<16x16xi32>
    %c15_i32 = arith.constant 15 : i32
    %17 = vector.broadcast %c15_i32 : i32 to vector<16x16xi32>
    %18 = arith.shrui %16, %17 : vector<16x16xi32>
    %19 = arith.xori %16, %18 : vector<16x16xi32>
    %c-2073254261_i32 = arith.constant -2073254261 : i32
    %20 = vector.broadcast %c-2073254261_i32 : i32 to vector<16x16xi32>
    %21 = arith.muli %19, %20 : vector<16x16xi32>
    %c16_i32_2 = arith.constant 16 : i32
    %22 = vector.broadcast %c16_i32_2 : i32 to vector<16x16xi32>
    %23 = arith.shrui %21, %22 : vector<16x16xi32>
    %24 = arith.xori %21, %23 : vector<16x16xi32>
    %c16777215_i32 = arith.constant 16777215 : i32
    %25 = vector.broadcast %c16777215_i32 : i32 to vector<16x16xi32>
    %26 = arith.andi %24, %25 : vector<16x16xi32>
    %27 = arith.sitofp %26 : vector<16x16xi32> to vector<16x16xf32>
    %cst = arith.constant 5.96046448E-8 : f32
    %28 = vector.broadcast %cst : f32 to vector<16x16xf32>
    %29 = arith.mulf %27, %28 : vector<16x16xf32>
    %cst_3 = arith.constant 1.000000e-07 : f32
    %30 = vector.broadcast %cst_3 : f32 to vector<16x16xf32>
    %31 = arith.maximumf %29, %30 : vector<16x16xf32>
    %32 = math.log %31 : vector<16x16xf32>
    %cst_4 = arith.constant 0.000000e+00 : f32
    %33 = vector.broadcast %cst_4 : f32 to vector<16x16xf32>
    %34 = arith.subf %33, %32 : vector<16x16xf32>
    %35 = math.log %34 : vector<16x16xf32>
    %cst_5 = arith.constant 0.000000e+00 : f32
    %36 = vector.broadcast %cst_5 : f32 to vector<16x16xf32>
    %37 = arith.subf %36, %35 : vector<16x16xf32>
    %c0_6 = arith.constant 0 : index
    %c0_7 = arith.constant 0 : index
    %38 = vector.load %arg2[%c0_6, %c0_7] : memref<16x16xf32, #tpu.memory_space<vmem>>, vector<16x16xf32>
    %39 = arith.addf %38, %37 : vector<16x16xf32>
    %40 = tpu.reduce_index %39 {axis = 1 : i32, kind = #tpu.reduction_kind<arg_max>} : vector<16x16xf32> -> vector<16xi32>
    %41 = vector.shape_cast %40 : vector<16xi32> to vector<16x1xi32>
    %c0_8 = arith.constant 0 : index
    %c0_9 = arith.constant 0 : index
    %42 = vector.load %arg3[%c0_8, %c0_9] : memref<16x1xi32, #tpu.memory_space<vmem>>, vector<16x1xi32>
    tpu.vector_store %arg3[%c0_8, %c0_9], %41 {strides = array<i32>} : memref<16x1xi32, #tpu.memory_space<vmem>>, vector<16x1xi32>,
    return
  }
  func.func @transform_0(%arg0: i32, %arg1: memref<1xi32, #tpu.memory_space<smem>>) -> (i32, i32) {
    %c0_i32 = arith.constant 0 : i32
    %c0_i32_0 = arith.constant 0 : i32
    return %arg0, %c0_i32 : i32, i32
  }
  func.func @transform_1(%arg0: i32, %arg1: memref<1xi32, #tpu.memory_space<smem>>) -> (i32, i32) {
    %c0_i32 = arith.constant 0 : i32
    %c0_i32_0 = arith.constant 0 : i32
    return %arg0, %c0_i32 : i32, i32
  }
}

</mosaic_0001>

<bundles_post_ra>
// kernel: tpu_custom_call.1
= control target key start
LH: loop header
LB: loop body
LE: loop exit
PB: predicated region body
PF: predicated region fallthrough
CT: control target
= control target key end

     0   :  { %8 = vsyncpa [#allocation5], 0  ;;  %s130_s9 = smov [#allocation4]   ;;  %s160_s0 = inlined_call_operand.<no memory space> [shape: s32[1], index: 0, kind: input, shape index: {}]   ;;  %s161_s1 = inlined_call_operand.hbm [shape: f32[16,16], index: 1, kind: input, shape index: {}]   ;;  %s162_s2 = inlined_call_operand.vmem [shape: s32[16,1], index: 2, kind: output, shape index: {}]  }
   0x1   :  { %s14_s10 = sshll.u32 %s130_s9, 4  ;;  %s15_s10 = int_to_ptr.vmem [resolvable:$true] %s14_s10 }
   0x2   :  { %s116_s11 = scalar_lea.vmem %s15_s10, 256  ;;  %p121_p1 = scmp.lt.s32.totalorder %s15_s10, %s15_s10 }
   0x3   :  { %p117_p0 = scmp.ne.s32.totalorder %s15_s10, %s116_s11  ;;  %p122_p2 = scmp.lt.s32.totalorder %s116_s11, %s116_s11 }
   0x5   :  { %p123_p3 = por %p122_p2, %p121_p1 }
   0x7   :  { %p124_p4 = pnand %p123_p3, %p117_p0 }
   0x9   :  { %127 = shalt.err (!%p124_p4)
}
   0xa   :  { %s131_s12 = smov 128   ;;  %s132_s13 = smov 8  }
   0xb   :  { %20 = dma.hbm_to_vmem [thread:$0]  %s161_s1, 256, %s15_s10, [#allocation5], %s131_s12, %s131_s12, %s132_s13  }
   0xc   :  { %128 = dma.done.wait [#allocation5], 256  }
   0xd   :  { %129 = vsyncadd [#allocation5], 4294967040  ;;  %v25_v0 = vlaneseq  ;;  %s38_s18 = smul.u32 2654435761, %s160_s0  ;;  %v78_v44 = vld [vmem:[#allocation4] sm:$0xff]  ;;  %vm82_vm0 = vcmask 130048  }
   0xe   :  { %v79_v47 = vld [vmem:[#allocation4 + $0x8] sm:$0xff]  ;;  %vm89_vm1 = vcmask 7168  }
   0xf   :  { %v26_v1 = vshrl.u32 %v25_v0, 7  ;;  %v33_v2 = vand.u32 127, %v25_v0  ;;  %v39_v5 = vstv %s38_s18 }
  0x11   :  { %v34_v3 = vmul.u32 16, %v26_v1  ;;  %v27_v4 = vadd.s32 8, %v26_v1 }
  0x13   :  { %v36_v6 = vadd.s32 %v34_v3, %v33_v2  ;;  %v35_v7 = vmul.u32 16, %v27_v4 }
  0x15   :  { %v40_v8 = vadd.s32 %v39_v5, %v36_v6  ;;  %v37_v9 = vadd.s32 %v35_v7, %v33_v2 }
  0x17   :  { %v42_v10 = vshrl.u32 %v40_v8, 16  ;;  %v41_v11 = vadd.s32 %v39_v5, %v37_v9 }
  0x19   :  { %v44_v12 = vxor.u32 %v42_v10, %v40_v8  ;;  %v43_v13 = vshrl.u32 %v41_v11, 16 }
  0x1b   :  { %v46_v14 = vmul.u32 2146121005, %v44_v12  ;;  %v45_v15 = vxor.u32 %v43_v13, %v41_v11 }
  0x1d   :  { %v48_v16 = vshrl.u32 %v46_v14, 15  ;;  %v47_v17 = vmul.u32 2146121005, %v45_v15 }
  0x1f   :  { %v50_v18 = vxor.u32 %v48_v16, %v46_v14  ;;  %v49_v19 = vshrl.u32 %v47_v17, 15 }
  0x21   :  { %v52_v20 = vmul.u32 2221713035, %v50_v18  ;;  %v51_v21 = vxor.u32 %v49_v19, %v47_v17 }
  0x23   :  { %v54_v22 = vshrl.u32 %v52_v20, 16  ;;  %v53_v23 = vmul.u32 2221713035, %v51_v21 }
  0x25   :  { %v56_v24 = vxor.u32 %v54_v22, %v52_v20  ;;  %v55_v25 = vshrl.u32 %v53_v23, 16 }
  0x27   :  { %v58_v26 = vand.u32 16777215, %v56_v24  ;;  %v57_v27 = vxor.u32 %v55_v25, %v53_v23 }
  0x29   :  { %v60_v28 = vcvt.s32.f32 %v58_v26  ;;  %v59_v29 = vand.u32 16777215, %v57_v27 }
  0x2b   :  { %v62_v30 = vmul.f32 5.9604645e-08, %v60_v28  ;;  %v61_v31 = vcvt.s32.f32 %v59_v29 }
  0x2d   :  { %v64_v32 = vmax.f32 %v62_v30, 1e-07  ;;  %v63_v33 = vmul.f32 5.9604645e-08, %v61_v31 }
  0x2f   :  { %100 = vlog2.f32 %v64_v32  ;;  %v65_v34 = vmax.f32 %v63_v33, 1e-07 }
  0x31   :  { %102 = vlog2.f32 %v65_v34 }
  0x3c   :  { %v101_v35 = vpop.eup %100 }
  0x3d   :  { %v67_v36 = vmul.f32 0.6931472, %v101_v35 }
  0x3e   :  { %v103_v37 = vpop.eup %102 }
  0x3f   :  { %v70_v38 = vsub.f32 0.0, %v67_v36  ;;  %v69_v39 = vmul.f32 0.6931472, %v103_v37 }
  0x41   :  { %104 = vlog2.f32 %v70_v38  ;;  %v71_v40 = vsub.f32 0.0, %v69_v39 }
  0x43   :  { %106 = vlog2.f32 %v71_v40 }
  0x4e   :  { %v105_v41 = vpop.eup %104 }
  0x4f   :  { %v73_v42 = vmul.f32 0.6931472, %v105_v41 }
  0x50   :  { %v107_v43 = vpop.eup %106 }
  0x51   :  { %v76_v45 = vsub.f32 0.0, %v73_v42  ;;  %v75_v46 = vmul.f32 0.6931472, %v107_v43 }
  0x53   :  { %v80_v48 = vadd.f32 %v78_v44, %v76_v45  ;;  %v77_v49 = vsub.f32 0.0, %v75_v46 }
  0x55   :  { %v83_v50 = vsel %vm82_vm0, %v80_v48, -inf  ;;  %v81_v51 = vadd.f32 %v79_v47, %v77_v49 }
  0x56   :  { %84 = vmax.index.xlane.f32.xlu0 %v83_v50 }
  0x57   :  { %v86_v52 = vsel %vm82_vm0, %v81_v51, -inf }
  0x5a   :  { %87 = vmax.index.xlane.f32.xlu0 %v86_v52 }
  0xdf   :  { %v85_v53 = vpop.xlane.xlu0 %84 }
  0xe0   :  { %90 = vst.msk [vmem:[%s162_s2] sm:$0xff] %vm89_vm1, %v85_v53 }
  0xe3   :  { %v88_v54 = vpop.xlane.xlu0 %87 }
  0xe4   :  { %91 = vst.msk [vmem:[%s162_s2 + $0x8] sm:$0xff] %vm89_vm1, %v88_v54 }
  0xe5   :  { %96 = vsyncpa [#allocation5], 1 }

</bundles_post_ra>
